<compile_context>
chip_gen: v7x
topology: tpu7x:2x2x1
jax: 0.10.0
libtpu: 0.0.40
codegen_flags: <defaults>
</compile_context>

<pallas_src>
import functools

import jax
import jax.numpy as jnp
from jax import lax
from jax.experimental import pallas as pl
from jax.experimental.pallas import tpu as pltpu

HIDDEN = 64


def _round_up(x, m):
    return (x + m - 1) // m * m


@functools.lru_cache(maxsize=1)
def _two_tensorcores():
    """True only on chips with 2 TensorCores (v7x); v5e/v6e grids are serial."""
    try:
        return "v7" in jax.devices()[0].device_kind.lower()
    except Exception:
        return False


def _select_tiling(batch, bm, two_cores):
    """Pick (tile, n_tiles): tile is a multiple of 128, minimizing padded work
    first, then the number of grid steps.  On v7x (2 TCs) prefer an even tile
    count so the batch-parallel grid keeps both TensorCores busy; on v5e/v6e
    splitting a tile only adds per-step overhead, so we don't."""
    b128 = _round_up(batch, 128)
    cap = min(_round_up(bm, 128), b128)
    best_tile, best_n, best_key = 128, -(-b128 // 128), None
    for t in range(128, cap + 1, 128):
        n = -(-b128 // t)
        if two_cores and b128 >= 256 and n % 2:
            n += 1                       # even tile count -> both TCs busy
        key = (n * t - b128, n)          # (padding, grid steps)
        if best_key is None or key < best_key:
            best_tile, best_n, best_key = t, n, key
    return best_tile, best_n


def critic_mlp_kernel(x_ref, w1_ref, b1_ref, w2_ref, b2_ref, w3_ref, b3_ref, o_ref):
    """Fused 3-layer MLP over one batch tile, feature-major compute.

    x_ref  : (tile, obs) f32   batch tile (rows = batch)
    w1_ref : (64, obs)   bf16  b1_ref : (64, 1) f32
    w2_ref : (64, 64)    bf16  b2_ref : (64, 1) f32
    w3_ref : (64, 1)     f32   (column form of the (1, 64) torch weight)
    b3_ref : (1, 1)      f32   SMEM scalar
    o_ref  : (1, tile)   f32   lane-dense output row (batch on lanes)
    """
    w1 = w1_ref[...]
    b1 = b1_ref[...]
    w2 = w2_ref[...]
    b2 = b2_ref[...]
    w3 = w3_ref[...]
    b3 = b3_ref[0, 0]

    tile = x_ref.shape[0]                      # static (block shape)
    chunk = 256 if tile % 256 == 0 else 128    # tile is always a multiple of 128
    n_chunks = tile // chunk

    # Fully-unrolled chunk loop (static trip count, static 128-aligned offsets):
    # keeps each chunk's h1/h2 live set inside the vreg file while the DMA
    # block (the BlockSpec tile) stays large.
    for c in range(n_chunks):
        off = c * chunk
        # bf16 cast happens here (no separate wrapper pass over x).
        xc = x_ref[pl.ds(off, chunk), :].astype(jnp.bfloat16)          # (chunk, obs)
        # W1 @ x_chunk^T: contract last dims of both operands (MXU, fp32 acc).
        h1 = lax.dot_general(w1, xc, (((1,), (1,)), ((), ())),
                             preferred_element_type=jnp.float32)        # (64, chunk)
        h1 = jnp.maximum(h1 + b1, 0.0)
        h2 = jnp.dot(w2, h1.astype(jnp.bfloat16),
                     preferred_element_type=jnp.float32)                # (64, chunk)
        h2 = jnp.maximum(h2 + b2, 0.0)
        # Layer 3: VPU multiply + cross-sublane (XLU) reduce, not an M=1 matmul.
        v = jnp.sum(w3 * h2, axis=0, keepdims=True) + b3                # (1, chunk)
        o_ref[:, pl.ds(off, chunk)] = v.astype(o_ref.dtype)


def prepare_kernel_params(params):
    """PyTorch-layout fp32 params -> kernel-ready operands (once, outside the step)."""
    (w1, b1), (w2, b2), (w3, b3) = params
    return (
        w1.astype(jnp.bfloat16),                     # (64, obs)
        b1.reshape(HIDDEN, 1).astype(jnp.float32),   # (64, 1)
        w2.astype(jnp.bfloat16),                     # (64, 64)
        b2.reshape(HIDDEN, 1).astype(jnp.float32),   # (64, 1)
        w3.reshape(HIDDEN, 1).astype(jnp.float32),   # (64, 1) column for VPU epilogue
        b3.reshape(1, 1).astype(jnp.float32),        # (1, 1)  -> SMEM scalar
    )


@functools.partial(jax.jit, static_argnames=("bm",))
def critic_forward(x, kparams, *, bm=2048):
    """x: (B, obs) float32 -> (B, 1) float32."""
    w1, b1, w2, b2, w3, b3 = kparams
    B, obs = x.shape

    tile, n_tiles = _select_tiling(B, bm, _two_tensorcores())
    B_pad = tile * n_tiles
    if B_pad != B:
        # Padded rows yield garbage in the padded lanes; sliced off below.
        # TODO(synk): accept a pre-padded batch / return the (1, B_pad) row
        # directly to drop the pad + slice launches entirely.
        x = jnp.pad(x, ((0, B_pad - B), (0, 0)))

    const = lambda i: (0, 0)
    flops = 2 * B_pad * (obs * HIDDEN + HIDDEN * HIDDEN + HIDDEN)
    bytes_accessed = (B_pad * obs * 4 + B_pad * 4
                      + (obs * HIDDEN + HIDDEN * HIDDEN) * 2
                      + (3 * HIDDEN + 1) * 4)

    out = pl.pallas_call(
        critic_mlp_kernel,
        out_shape=jax.ShapeDtypeStruct((1, B_pad), jnp.float32),
        grid=(n_tiles,),
        in_specs=[
            # x tile is the only streaming input (default double-buffering;
            # add pipeline_mode=pl.Buffered(3) here if the DMA is still exposed).
            pl.BlockSpec((tile, obs), lambda i: (i, 0)),
            pl.BlockSpec((HIDDEN, obs), const),                  # W1 (resident)
            pl.BlockSpec((HIDDEN, 1), const),                    # b1
            pl.BlockSpec((HIDDEN, HIDDEN), const),               # W2 (resident)
            pl.BlockSpec((HIDDEN, 1), const),                    # b2
            pl.BlockSpec((HIDDEN, 1), const),                    # w3 column
            pl.BlockSpec(memory_space=pltpu.MemorySpace.SMEM),   # b3 scalar
        ],
        out_specs=pl.BlockSpec((1, tile), lambda i: (0, i)),     # lane-dense output
        compiler_params=pltpu.CompilerParams(
            dimension_semantics=("parallel",)),
        cost_estimate=pl.CostEstimate(
            flops=flops, transcendentals=0, bytes_accessed=bytes_accessed),
    )(x, w1, b1, w2, b2, w3, b3)

    return out[0, :B][:, None]                                   # (B, 1)


def init_params(key, obs_size, hidden=HIDDEN):
    """PyTorch-style init: W (out, in), b (out,), uniform(-1/sqrt(fan_in), ...)."""
    ks = jax.random.split(key, 6)

    def linear(kw, kb, fan_in, fan_out):
        bound = 1.0 / float(fan_in) ** 0.5
        w = jax.random.uniform(kw, (fan_out, fan_in), jnp.float32, -bound, bound)
        b = jax.random.uniform(kb, (fan_out,), jnp.float32, -bound, bound)
        return w, b

    return (linear(ks[0], ks[1], obs_size, hidden),
            linear(ks[2], ks[3], hidden, hidden),
            linear(ks[4], ks[5], hidden, 1))


def critic_reference(x, params):
    (w1, b1), (w2, b2), (w3, b3) = params
    h1 = jnp.maximum(x @ w1.T + b1, 0.0)
    h2 = jnp.maximum(h1 @ w2.T + b2, 0.0)
    return h2 @ w3.T + b3


if __name__ == "__main__":
    key = jax.random.PRNGKey(0)
    k_x, k_x2, k_p = jax.random.split(key, 3)

    obs_size = 32
    params = init_params(k_p, obs_size)
    kparams = prepare_kernel_params(params)

    # Small batch: exercises the pad path + a single 128-lane tile.
    x_small = jax.random.normal(k_x, (8, obs_size), jnp.float32)
    out_small = jax.block_until_ready(critic_forward(x_small, kparams))
    ref_small = critic_reference(x_small, params)
    assert out_small.shape == (8, 1)
    err_s = float(jnp.max(jnp.abs(out_small - ref_small)))
    # bf16 MXU inputs with fp32 accumulation -> loosened tolerance vs fp32 ref
    assert jnp.allclose(out_small, ref_small, atol=5e-2, rtol=5e-2), (
        f"small-batch mismatch vs reference, max abs diff {err_s}")

    # Larger batch: exercises the in-kernel chunk loop (and v7x even-tile split).
    x_big = jax.random.normal(k_x2, (384, obs_size), jnp.float32)
    out_big = jax.block_until_ready(critic_forward(x_big, kparams))
    ref_big = critic_reference(x_big, params)
    assert out_big.shape == (384, 1)
    err_b = float(jnp.max(jnp.abs(out_big - ref_big)))
    assert jnp.allclose(out_big, ref_big, atol=5e-2, rtol=5e-2), (
        f"large-batch mismatch vs reference, max abs diff {err_b}")

    print("KERNEL_OK")
</pallas_src>

<mosaic_0001>
module attributes {stable_mosaic.version = 11 : i64} {
  func.func @critic_mlp_kernel(%arg0: i32, %arg1: memref<128x32xf32, #tpu.memory_space<vmem>>, %arg2: memref<64x32xbf16, #tpu.memory_space<vmem>>, %arg3: memref<64x1xf32, #tpu.memory_space<vmem>>, %arg4: memref<64x64xbf16, #tpu.memory_space<vmem>>, %arg5: memref<64x1xf32, #tpu.memory_space<vmem>>, %arg6: memref<64x1xf32, #tpu.memory_space<vmem>>, %arg7: memref<1x1xf32, #tpu.memory_space<smem>>, %arg8: memref<1x128xf32, #tpu.memory_space<vmem>>) attributes {dimension_semantics = [#tpu.dimension_semantics<parallel>], iteration_bounds = array<i64: 1>, scalar_prefetch = 0 : i64, scratch_operands = 0 : i64, tpu.core_type = #tpu.core_type<tc>, window_params = [{transform_indices = @transform_0, window_bounds = array<i64: 128, 32>}, {pipeline_mode = #tpu.pipeline_mode<synchronous>, transform_indices = @transform_1, window_bounds = array<i64: 64, 32>}, {pipeline_mode = #tpu.pipeline_mode<synchronous>, transform_indices = @transform_2, window_bounds = array<i64: 64, 1>}, {pipeline_mode = #tpu.pipeline_mode<synchronous>, transform_indices = @transform_3, window_bounds = array<i64: 64, 64>}, {pipeline_mode = #tpu.pipeline_mode<synchronous>, transform_indices = @transform_4, window_bounds = array<i64: 64, 1>}, {pipeline_mode = #tpu.pipeline_mode<synchronous>, transform_indices = @transform_5, window_bounds = array<i64: 64, 1>}, {transform_indices = @transform_6, window_bounds = array<i64: 1, 1>}, {transform_indices = @transform_7, window_bounds = array<i64: 1, 128>}]} {
    %c0 = arith.constant 0 : index
    %c0_0 = arith.constant 0 : index
    %0 = vector.load %arg2[%c0, %c0_0] : memref<64x32xbf16, #tpu.memory_space<vmem>>, vector<64x32xbf16>
    %c0_1 = arith.constant 0 : index
    %c0_2 = arith.constant 0 : index
    %1 = vector.load %arg3[%c0_1, %c0_2] : memref<64x1xf32, #tpu.memory_space<vmem>>, vector<64x1xf32>
    %c0_3 = arith.constant 0 : index
    %c0_4 = arith.constant 0 : index
    %2 = vector.load %arg4[%c0_3, %c0_4] : memref<64x64xbf16, #tpu.memory_space<vmem>>, vector<64x64xbf16>
    %c0_5 = arith.constant 0 : index
    %c0_6 = arith.constant 0 : index
    %3 = vector.load %arg5[%c0_5, %c0_6] : memref<64x1xf32, #tpu.memory_space<vmem>>, vector<64x1xf32>
    %c0_7 = arith.constant 0 : index
    %c0_8 = arith.constant 0 : index
    %4 = vector.load %arg6[%c0_7, %c0_8] : memref<64x1xf32, #tpu.memory_space<vmem>>, vector<64x1xf32>
    %c0_9 = arith.constant 0 : index
    %c0_10 = arith.constant 0 : index
    %5 = memref.load %arg7[%c0_9, %c0_10] : memref<1x1xf32, #tpu.memory_space<smem>>
    %c0_11 = arith.constant 0 : index
    %c0_12 = arith.constant 0 : index
    %6 = vector.load %arg1[%c0_11, %c0_12] : memref<128x32xf32, #tpu.memory_space<vmem>>, vector<128x32xf32>
    %7 = arith.truncf %6 : vector<128x32xf32> to vector<128x32xbf16>
    %cst = arith.constant dense<0.000000e+00> : vector<64x128xf32>
    %8 = tpu.matmul %0, %7, %cst {dimension_numbers = #tpu.dot_dimension_numbers<[1], [1], [0], [0], [0, 0, 1, 0], [], []>} : vector<64x32xbf16>, vector<128x32xbf16>, vector<64x128xf32> -> vector<64x128xf32>
    %9 = vector.broadcast %1 : vector<64x1xf32> to vector<64x128xf32>
    %10 = arith.addf %8, %9 : vector<64x128xf32>
    %cst_13 = arith.constant 0.000000e+00 : f32
    %11 = vector.broadcast %cst_13 : f32 to vector<64x128xf32>
    %12 = arith.maximumf %10, %11 : vector<64x128xf32>
    %13 = arith.truncf %12 : vector<64x128xf32> to vector<64x128xbf16>
    %cst_14 = arith.constant dense<0.000000e+00> : vector<64x128xf32>
    %14 = tpu.matmul %2, %13, %cst_14 {dimension_numbers = #tpu.dot_dimension_numbers<[1], [0], [0], [1], [0, 0, 1, 1], [], []>} : vector<64x64xbf16>, vector<64x128xbf16>, vector<64x128xf32> -> vector<64x128xf32>
    %15 = vector.broadcast %3 : vector<64x1xf32> to vector<64x128xf32>
    %16 = arith.addf %14, %15 : vector<64x128xf32>
    %cst_15 = arith.constant 0.000000e+00 : f32
    %17 = vector.broadcast %cst_15 : f32 to vector<64x128xf32>
    %18 = arith.maximumf %16, %17 : vector<64x128xf32>
    %19 = vector.broadcast %4 : vector<64x1xf32> to vector<64x128xf32>
    %20 = arith.mulf %19, %18 : vector<64x128xf32>
    %cst_16 = arith.constant dense<0.000000e+00> : vector<128xf32>
    %21 = vector.multi_reduction <add>, %20, %cst_16 [0] : vector<64x128xf32> to vector<128xf32>
    %22 = vector.shape_cast %21 : vector<128xf32> to vector<1x128xf32>
    %23 = vector.broadcast %5 : f32 to vector<1x128xf32>
    %24 = arith.addf %22, %23 : vector<1x128xf32>
    %c0_17 = arith.constant 0 : index
    %c0_18 = arith.constant 0 : index
    %25 = vector.load %arg8[%c0_17, %c0_18] : memref<1x128xf32, #tpu.memory_space<vmem>>, vector<1x128xf32>
    tpu.vector_store %arg8[%c0_17, %c0_18], %24 {strides = array<i32>} : memref<1x128xf32, #tpu.memory_space<vmem>>, vector<1x128xf32>,
    return
  }
  func.func @transform_0(%arg0: i32) -> (i32, i32) {
    %c0_i32 = arith.constant 0 : i32
    %c0_i32_0 = arith.constant 0 : i32
    return %arg0, %c0_i32 : i32, i32
  }
  func.func @transform_1(%arg0: i32) -> (i32, i32) {
    %c0_i32 = arith.constant 0 : i32
    %c0_i32_0 = arith.constant 0 : i32
    %c0_i32_1 = arith.constant 0 : i32
    return %c0_i32, %c0_i32_0 : i32, i32
  }
  func.func @transform_2(%arg0: i32) -> (i32, i32) {
    %c0_i32 = arith.constant 0 : i32
    %c0_i32_0 = arith.constant 0 : i32
    %c0_i32_1 = arith.constant 0 : i32
    return %c0_i32, %c0_i32_0 : i32, i32
  }
  func.func @transform_3(%arg0: i32) -> (i32, i32) {
    %c0_i32 = arith.constant 0 : i32
    %c0_i32_0 = arith.constant 0 : i32
    %c0_i32_1 = arith.constant 0 : i32
    return %c0_i32, %c0_i32_0 : i32, i32
  }
  func.func @transform_4(%arg0: i32) -> (i32, i32) {
    %c0_i32 = arith.constant 0 : i32
    %c0_i32_0 = arith.constant 0 : i32
    %c0_i32_1 = arith.constant 0 : i32
    return %c0_i32, %c0_i32_0 : i32, i32
  }
  func.func @transform_5(%arg0: i32) -> (i32, i32) {
    %c0_i32 = arith.constant 0 : i32
    %c0_i32_0 = arith.constant 0 : i32
    %c0_i32_1 = arith.constant 0 : i32
    return %c0_i32, %c0_i32_0 : i32, i32
  }
  func.func @transform_6(%arg0: i32) -> (i32, i32) {
    %c0_i32 = arith.constant 0 : i32
    %c0_i32_0 = arith.constant 0 : i32
    %c0_i32_1 = arith.constant 0 : i32
    return %c0_i32, %c0_i32_0 : i32, i32
  }
  func.func @transform_7(%arg0: i32) -> (i32, i32) {
    %c0_i32 = arith.constant 0 : i32
    %c0_i32_0 = arith.constant 0 : i32
    return %c0_i32, %arg0 : i32, i32
  }
}

</mosaic_0001>

<bundles_post_ra>
// kernel: critic_forward.1
= control target key start
LH: loop header
LB: loop body
LE: loop exit
PB: predicated region body
PF: predicated region fallthrough
CT: control target
= control target key end

     0   :  { %vm153_vm0 = vcmask 261120   ;;  %v576_v3 = vmov 0   ;;  %vm327_vm1 = vcmask 523264   ;;  %s791_s0 = inlined_call_operand.vmem [shape: f32[128,32], index: 0, kind: input, shape index: {}]   ;;  %s792_s1 = inlined_call_operand.vmem [shape: bf16[64,32], index: 1, kind: input, shape index: {}]   ;;  %s793_s2 = inlined_call_operand.vmem [shape: f32[64,1], index: 2, kind: input, shape index: {}]   ;;  %s794_s4 = inlined_call_operand.vmem [shape: f32[64,1], index: 4, kind: input, shape index: {}]   ;;  %s795_s5 = inlined_call_operand.vmem [shape: f32[64,1], index: 5, kind: input, shape index: {}]   ;;  %s796_s3 = inlined_call_operand.vmem [shape: bf16[64,64], index: 3, kind: input, shape index: {}]   ;;  %s797_s6 = inlined_call_operand.<no memory space> [shape: f32[1,1], index: 6, kind: input, shape index: {}]   ;;  %s798_s7 = inlined_call_operand.vmem [shape: f32[1,128], index: 7, kind: output, shape index: {}]  }
   0x1   :  { %v69_v0 = vld [vmem:[%s791_s0] sm:$0xff]  ;;  %v70_v1 = vld [vmem:[%s791_s0 + $0x8] sm:$0xff]  ;;  %v71_v2 = vld [vmem:[%s791_s0 + $0x10] sm:$0xff]  ;;  %566 = vset.pattern.permute.xlu0 %v576_v3  ;;  %567 = vset.pattern.permute.xlu1 %v576_v3 }
   0x2   :  { %v85_v4 = vpack.c.bf16 %v70_v1, %v69_v0  ;;  %v72_v5 = vld [vmem:[%s791_s0 + $0x18] sm:$0xff]  ;;  %v73_v8 = vld [vmem:[%s791_s0 + $0x20] sm:$0xff]  ;;  %v74_v9 = vld [vmem:[%s791_s0 + $0x28] sm:$0xff] }
   0x3   :  { %v86_v6 = vpack.c.bf16 %v72_v5, %v71_v2  ;;  %v568_v10 = vld [vmem:[%s792_s1] sm:$0xff]   ;;  %v87_v12 = vpack.c.bf16 %v74_v9, %v73_v8  ;;  %v38_v14 = vld [vmem:[%s793_s2 + $0x10] sm:$0xff]  ;;  %v37_v15 = vld [vmem:[%s793_s2 + $0x8] sm:$0xff] }
   0x4   :  { %557 = vmatprep.subr.msk.bf16.mxu0 %vm153_vm0, %v85_v4  ;;  %v167_v7 = vsel %vm153_vm0, %v85_v4, 0  ;;  %533 = vmatprep.mubr.msk.bf16.mxu0 %vm153_vm0, %v568_v10  ;;  %v36_v13 = vld [vmem:[%s793_s2] sm:$0xff]  ;;  %v39_v16 = vld [vmem:[%s793_s2 + $0x18] sm:$0xff]  ;;  %v75_v17 = vld [vmem:[%s791_s0 + $0x30] sm:$0xff] }
   0x5   :  { %518 = vmatpush3.bf16.xpose.msra.mxu0 %v167_v7  ;;  %v170_v11 = vsel %vm153_vm0, %v86_v6, 0  ;;  %95 = vperm.xlu0 %566, %v36_v13   ;;  %v76_v18 = vld [vmem:[%s791_s0 + $0x38] sm:$0xff]  ;;  %v40_v19 = vld [vmem:[%s793_s2 + $0x20] sm:$0xff]  ;;  %v41_v20 = vld [vmem:[%s793_s2 + $0x28] sm:$0xff]  ;;  %v173_v21 = vsel %vm153_vm0, %v87_v12, 0 }
   0x6   :  { %558 = vmatprep.subr.msk.bf16.mxu0 %vm153_vm0, %v86_v6  ;;  %105 = vperm.xlu1 %567, %v38_v14   ;;  %v88_v22 = vpack.c.bf16 %v76_v18, %v75_v17  ;;  %v42_v23 = vld [vmem:[%s793_s2 + $0x30] sm:$0xff]  ;;  %v43_v24 = vld [vmem:[%s793_s2 + $0x38] sm:$0xff]  ;;  %v77_v25 = vld [vmem:[%s791_s0 + $0x40] sm:$0xff] }
   0x7   :  { %v78_v26 = vld [vmem:[%s791_s0 + $0x48] sm:$0xff]  ;;  %v52_v27 = vld [vmem:[%s794_s4] sm:$0xff]  ;;  %v54_v31 = vld [vmem:[%s794_s4 + $0x10] sm:$0xff] }
   0x8   :  { %v53_v28 = vld [vmem:[%s794_s4 + $0x8] sm:$0xff]  ;;  %v176_v29 = vsel %vm153_vm0, %v88_v22, 0  ;;  %v89_v30 = vpack.c.bf16 %v78_v26, %v77_v25  ;;  %v55_v32 = vld [vmem:[%s794_s4 + $0x18] sm:$0xff]  ;;  %v79_v33 = vld [vmem:[%s791_s0 + $0x50] sm:$0xff] }
   0x9   :  { %100 = vperm.xlu0 %566, %v37_v15   ;;  %v80_v34 = vld [vmem:[%s791_s0 + $0x58] sm:$0xff]  ;;  %v60_v35 = vld [vmem:[%s795_s5] sm:$0xff]  ;;  %v61_v36 = vld [vmem:[%s795_s5 + $0x8] sm:$0xff] }
   0xa   :  { %110 = vperm.xlu1 %567, %v39_v16   ;;  %v179_v37 = vsel %vm153_vm0, %v89_v30, 0  ;;  %v90_v38 = vpack.c.bf16 %v80_v34, %v79_v33  ;;  %v56_v39 = vld [vmem:[%s794_s4 + $0x20] sm:$0xff]  ;;  %v62_v40 = vld [vmem:[%s795_s5 + $0x10] sm:$0xff]  ;;  %v82_v42 = vld [vmem:[%s791_s0 + $0x68] sm:$0xff] }
   0xb   :  { %v81_v41 = vld [vmem:[%s791_s0 + $0x60] sm:$0xff]  ;;  %v57_v43 = vld [vmem:[%s794_s4 + $0x28] sm:$0xff]  ;;  %v63_v44 = vld [vmem:[%s795_s5 + $0x18] sm:$0xff] }
   0xc   :  { %v182_v45 = vsel %vm153_vm0, %v90_v38, 0  ;;  %v91_v46 = vpack.c.bf16 %v82_v42, %v81_v41  ;;  %v58_v47 = vld [vmem:[%s794_s4 + $0x30] sm:$0xff]  ;;  %v64_v48 = vld [vmem:[%s795_s5 + $0x20] sm:$0xff]  ;;  %v84_v50 = vld [vmem:[%s791_s0 + $0x78] sm:$0xff] }
   0xd   :  { %520 = vmatpush3.bf16.xpose.msra.mxu0 %v170_v11  ;;  %115 = vperm.xlu0 %566, %v40_v19   ;;  %v83_v49 = vld [vmem:[%s791_s0 + $0x70] sm:$0xff]  ;;  %v59_v51 = vld [vmem:[%s794_s4 + $0x38] sm:$0xff]  ;;  %v65_v52 = vld [vmem:[%s795_s5 + $0x28] sm:$0xff] }
   0xe   :  { %559 = vmatprep.subr.msk.bf16.mxu0 %vm153_vm0, %v87_v12  ;;  %120 = vperm.xlu1 %567, %v41_v20   ;;  %v185_v53 = vsel %vm153_vm0, %v91_v46, 0  ;;  %v92_v54 = vpack.c.bf16 %v84_v50, %v83_v49  ;;  %v66_v55 = vld [vmem:[%s795_s5 + $0x30] sm:$0xff]  ;;  %v67_v56 = vld [vmem:[%s795_s5 + $0x38] sm:$0xff]  ;;  %v569_v58 = vld [vmem:[%s792_s1 + $0x8] sm:$0xff]  }
   0xf   :  { %v570_v59 = vld [vmem:[%s792_s1 + $0x10] sm:$0xff]   ;;  %v571_v60 = vld [vmem:[%s792_s1 + $0x18] sm:$0xff]   ;;  %v572_v61 = vld [vmem:[%s796_s3] sm:$0xff]  }
  0x10   :  { %v188_v57 = vsel %vm153_vm0, %v92_v54, 0  ;;  %549 = vmatprep.mubr.msk.bf16.mxu1 %vm327_vm1, %v572_v61  ;;  %v573_v34 = vld [vmem:[%s796_s3 + $0x8] sm:$0xff]  }
  0x11   :  { %125 = vperm.xlu0 %566, %v42_v23  }
  0x12   :  { %130 = vperm.xlu1 %567, %v43_v24  }
  0x15   :  { %522 = vmatpush3.bf16.xpose.msra.mxu0 %v173_v21  ;;  %269 = vperm.xlu0 %566, %v52_v27  }
  0x16   :  { %560 = vmatprep.subr.msk.bf16.mxu0 %vm153_vm0, %v88_v22  ;;  %274 = vperm.xlu1 %567, %v53_v28  }
  0x19   :  { %279 = vperm.xlu0 %566, %v54_v31  }
  0x1a   :  { %284 = vperm.xlu1 %567, %v55_v32  }
  0x1d   :  { %524 = vmatpush3.bf16.xpose.msra.mxu0 %v176_v29  ;;  %415 = vperm.xlu0 %566, %v60_v35   ;;  %v574_v35 = vld [vmem:[%s796_s3 + $0x10] sm:$0xff]  }
  0x1e   :  { %561 = vmatprep.subr.msk.bf16.mxu0 %vm153_vm0, %v89_v30  ;;  %420 = vperm.xlu1 %567, %v61_v36   ;;  %v575_v36 = vld [vmem:[%s796_s3 + $0x18] sm:$0xff]  }
  0x21   :  { %289 = vperm.xlu0 %566, %v56_v39  }
  0x22   :  { %425 = vperm.xlu1 %567, %v62_v40  }
  0x25   :  { %526 = vmatpush3.bf16.xpose.msra.mxu0 %v179_v37  ;;  %294 = vperm.xlu0 %566, %v57_v43  }
  0x26   :  { %562 = vmatprep.subr.msk.bf16.mxu0 %vm153_vm0, %v90_v38  ;;  %430 = vperm.xlu1 %567, %v63_v44  }
  0x29   :  { %299 = vperm.xlu0 %566, %v58_v47  }
  0x2a   :  { %435 = vperm.xlu1 %567, %v64_v48  }
  0x2d   :  { %528 = vmatpush3.bf16.xpose.msra.mxu0 %v182_v45  ;;  %304 = vperm.xlu0 %566, %v59_v51  }
  0x2e   :  { %563 = vmatprep.subr.msk.bf16.mxu0 %vm153_vm0, %v91_v46  ;;  %440 = vperm.xlu1 %567, %v65_v52  }
  0x31   :  { %445 = vperm.xlu0 %566, %v66_v55  }
  0x32   :  { %450 = vperm.xlu1 %567, %v67_v56  }
  0x35   :  { %530 = vmatpush3.bf16.xpose.msra.mxu0 %v185_v53 }
  0x36   :  { %564 = vmatprep.subr.msk.bf16.mxu0 %vm153_vm0, %v92_v54 }
  0x3d   :  { %532 = vmatpush3.bf16.xpose.msra.mxu0 %v188_v57 }
  0x44   :  { %534 = vmatmul.mubr.msk.bf16.vlgmr.msra.gmra.mrb[0].mxu0 %vm153_vm0, %v569_v58 }
  0x45   :  { %537 = vmatprep.mubr.msk.bf16.mxu0 %vm153_vm0, %v570_v59 }
  0x4c   :  { %538 = vmatmul.mubr.msk.bf16.gmra.mrb[4].mxu0 %vm153_vm0, %v571_v60 }
  0x84   :  { %v96_v62 = vpop.permute.xlu0 %95 }
  0x85   :  { %v106_v63 = vpop.permute.xlu1 %105 }
  0x88   :  { %v101_v0 = vpop.permute.xlu0 %100 }
  0x89   :  { %v111_v1 = vpop.permute.xlu1 %110 }
  0x8c   :  { %v116_v5 = vpop.permute.xlu0 %115 }
  0x8d   :  { %v121_v10 = vpop.permute.xlu1 %120 }
  0x90   :  { %v126_v17 = vpop.permute.xlu0 %125 }
  0x91   :  { %v131_v22 = vpop.permute.xlu1 %130 }
  0x94   :  { %v270_v37 = vpop.permute.xlu0 %269 }
  0x95   :  { %v275_v38 = vpop.permute.xlu1 %274 }
  0x98   :  { %v280_v39 = vpop.permute.xlu0 %279 }
  0x99   :  { %v285_v40 = vpop.permute.xlu1 %284 }
  0x9c   :  { %v416_v41 = vpop.permute.xlu0 %415 }
  0x9d   :  { %v421_v42 = vpop.permute.xlu1 %420 }
  0xa0   :  { %v290_v43 = vpop.permute.xlu0 %289 }
  0xa1   :  { %v426_v44 = vpop.permute.xlu1 %425 }
  0xa4   :  { %v295_v45 = vpop.permute.xlu0 %294 }
  0xa5   :  { %v431_v47 = vpop.permute.xlu1 %430 }
  0xa8   :  { %v300_v56 = vpop.permute.xlu0 %299 }
  0xa9   :  { %v436_v59 = vpop.permute.xlu1 %435 }
 0x117   :  { %v535_v2 = vpop.f32.mrb[0].mxu0 }
 0x118   :  { %v233_v3 = vadd.f32 %v535_v2, %v106_v63  ;;  %v224_v4 = vpop.f32.mrb[1].mxu0 }
 0x119   :  { %v225_v6 = vadd.f32 %v224_v4, %v96_v62  ;;  %v536_v7 = vpop.f32.mrb[2].mxu0 }
 0x11a   :  { %v236_v8 = vadd.f32 %v536_v7, %v111_v1  ;;  %v227_v9 = vpop.f32.mrb[3].mxu0  ;;  %v257_v12 = vmax.f32 %v233_v3, 0.0 }
 0x11b   :  { %v228_v11 = vadd.f32 %v227_v9, %v101_v0  ;;  %v255_v14 = vmax.f32 %v225_v6, 0.0  ;;  %v305_v6 = vpop.permute.xlu0 %304 }
 0x11c   :  { %v258_v13 = vmax.f32 %v236_v8, 0.0 }
 0x11d   :  { %v256_v15 = vmax.f32 %v228_v11, 0.0 }
 0x11e   :  { %v264_v16 = vpack.c.bf16 %v258_v13, %v257_v12  ;;  %v441_v13 = vpop.permute.xlu1 %440 }
 0x11f   :  { %v539_v18 = vpop.f32.mrb[4].mxu0  ;;  %v263_v19 = vpack.c.bf16 %v256_v15, %v255_v14 }
 0x120   :  { %v249_v20 = vadd.f32 %v539_v18, %v126_v17  ;;  %v240_v21 = vpop.f32.mrb[5].mxu0 }
 0x121   :  { %v241_v23 = vadd.f32 %v240_v21, %v116_v5  ;;  %v540_v24 = vpop.f32.mrb[6].mxu0  ;;  %541 = vmatprep.subr.bf16.mxu1 %v263_v19  ;;  %v446_v21 = vpop.permute.xlu0 %445 }
 0x122   :  { %v252_v25 = vadd.f32 %v540_v24, %v131_v22  ;;  %v243_v26 = vpop.f32.mrb[7].mxu0  ;;  %542 = vmatpush3.bf16.msra.mxu1 %v263_v19  ;;  %v261_v28 = vmax.f32 %v249_v20, 0.0  ;;  %v451_v24 = vpop.permute.xlu1 %450 }
 0x123   :  { %v244_v27 = vadd.f32 %v243_v26, %v121_v10  ;;  %543 = vmatprep.subr.bf16.mxu1 %v264_v16  ;;  %v259_v30 = vmax.f32 %v241_v23, 0.0 }
 0x124   :  { %v262_v29 = vmax.f32 %v252_v25, 0.0 }
 0x125   :  { %v260_v31 = vmax.f32 %v244_v27, 0.0 }
 0x126   :  { %v266_v32 = vpack.c.bf16 %v262_v29, %v261_v28  ;;  %544 = vmatpush3.bf16.msra.mxu1 %v264_v16 }
 0x127   :  { %v265_v33 = vpack.c.bf16 %v260_v31, %v259_v30 }
 0x129   :  { %545 = vmatprep.subr.bf16.mxu1 %v265_v33 }
 0x12a   :  { %546 = vmatpush3.bf16.msra.mxu1 %v265_v33  ;;  %v474_v33 = vstv %s797_s6 }
 0x12b   :  { %547 = vmatprep.subr.bf16.mxu1 %v266_v32 }
 0x12e   :  { %548 = vmatpush3.bf16.msra.mxu1 %v266_v32 }
 0x131   :  { %550 = vmatmul.mubr.msk.bf16.vlgmr.msra.gmra.mrb[0].mxu1 %vm327_vm1, %v573_v34 }
 0x132   :  { %553 = vmatprep.mubr.msk.bf16.mxu1 %vm327_vm1, %v574_v35 }
 0x139   :  { %554 = vmatmul.mubr.msk.bf16.gmra.mrb[4].mxu1 %vm327_vm1, %v575_v36 }
 0x204   :  { %v551_v46 = vpop.f32.mrb[0].mxu1 }
 0x205   :  { %v374_v48 = vpop.f32.mrb[1].mxu1  ;;  %v383_v49 = vadd.f32 %v551_v46, %v280_v39 }
 0x206   :  { %v375_v50 = vadd.f32 %v374_v48, %v270_v37  ;;  %v552_v51 = vpop.f32.mrb[2].mxu1 }
 0x207   :  { %v386_v52 = vadd.f32 %v552_v51, %v285_v40  ;;  %v377_v53 = vpop.f32.mrb[3].mxu1  ;;  %v407_v57 = vmax.f32 %v383_v49, 0.0 }
 0x208   :  { %v405_v54 = vmax.f32 %v375_v50, 0.0  ;;  %v378_v55 = vadd.f32 %v377_v53, %v275_v38 }
 0x209   :  { %v408_v60 = vmax.f32 %v386_v52, 0.0  ;;  %v455_v1 = vmul.f32 %v426_v44, %v407_v57 }
 0x20a   :  { %v406_v58 = vmax.f32 %v378_v55, 0.0  ;;  %v453_v61 = vmul.f32 %v416_v41, %v405_v54 }
 0x20b   :  { %v456_v7 = vmul.f32 %v431_v47, %v408_v60 }
 0x20c   :  { %v454_v62 = vmul.f32 %v421_v42, %v406_v58  ;;  %v555_v63 = vpop.f32.mrb[4].mxu1 }
 0x20d   :  { %v390_v0 = vpop.f32.mrb[5].mxu1  ;;  %v399_v3 = vadd.f32 %v555_v63, %v300_v56 }
 0x20e   :  { %v461_v2 = vadd.f32 %v454_v62, %v453_v61  ;;  %v391_v4 = vadd.f32 %v390_v0, %v290_v43  ;;  %v556_v5 = vpop.f32.mrb[6].mxu1 }
 0x20f   :  { %v393_v8 = vpop.f32.mrb[7].mxu1  ;;  %v402_v11 = vadd.f32 %v556_v5, %v305_v6  ;;  %v411_v14 = vmax.f32 %v399_v3, 0.0 }
 0x210   :  { %v462_v9 = vadd.f32 %v461_v2, %v455_v1  ;;  %v409_v10 = vmax.f32 %v391_v4, 0.0  ;;  %v394_v12 = vadd.f32 %v393_v8, %v295_v45 }
 0x211   :  { %v412_v19 = vmax.f32 %v402_v11, 0.0  ;;  %v459_v22 = vmul.f32 %v446_v21, %v411_v14 }
 0x212   :  { %v457_v15 = vmul.f32 %v436_v59, %v409_v10  ;;  %v463_v16 = vadd.f32 %v462_v9, %v456_v7  ;;  %v410_v17 = vmax.f32 %v394_v12, 0.0 }
 0x213   :  { %v460_v25 = vmul.f32 %v451_v24, %v412_v19 }
 0x214   :  { %v464_v18 = vadd.f32 %v463_v16, %v457_v15  ;;  %v458_v20 = vmul.f32 %v441_v13, %v410_v17 }
 0x216   :  { %v465_v23 = vadd.f32 %v464_v18, %v458_v20 }
 0x218   :  { %v466_v26 = vadd.f32 %v465_v23, %v459_v22 }
 0x21a   :  { %v467_v27 = vadd.f32 %v466_v26, %v460_v25 }
 0x21c   :  { %v468_v28 = vrot.slane %v467_v27, 4 }
 0x21e   :  { %v469_v29 = vadd.f32 %v468_v28, %v467_v27 }
 0x220   :  { %v470_v30 = vrot.slane %v469_v29, 2 }
 0x222   :  { %v471_v31 = vadd.f32 %v470_v30, %v469_v29 }
 0x224   :  { %v472_v32 = vrot.slane %v471_v31, 1 }
 0x226   :  { %v473_v34 = vadd.f32 %v472_v32, %v471_v31 }
 0x228   :  { %v475_v35 = vadd.f32 %v474_v33, %v473_v34 }
 0x22a   :  { %476 = vst [vmem:[%s798_s7] sm:$0x1] %v475_v35 }

</bundles_post_ra>
